<compile_context>
chip_gen: v5e
topology: v5e:2x2
jax: 0.10.0
libtpu: 0.0.40
codegen_flags: <defaults>
</compile_context>

<pallas_src>
import jax
import jax.numpy as jnp
from jax.experimental import pallas as pl
from jax.experimental.pallas import tpu as pltpu

LANES = 128
NEG_SLOPE = 0.01  # F.leaky_relu_ default negative_slope


def _mask_kernel(params_ref, x_ref, g_ref, o_ref):
    # params (SMEM, f32[5]): [w_theta, w_phi, b_phi, w_psi, b_psi]
    w_theta = params_ref[0]
    w_phi = params_ref[1]
    b_phi = params_ref[2]
    w_psi = params_ref[3]
    b_psi = params_ref[4]

    x = x_ref[...].astype(jnp.float32)
    g = g_ref[...].astype(jnp.float32)

    # theta(x) + phi(g): two fma-style ops.
    s = x * w_theta + g * w_phi + b_phi
    f = jnp.maximum(s, NEG_SLOPE * s)          # leaky_relu_ (single vmax)

    p = f * w_psi + b_psi                      # psi: 1x1x1 conv + bias
    sp = jnp.maximum(p, NEG_SLOPE * p)         # leaky_relu_ (single vmax)

    # sigmoid(sp * x) written so the transcendental lands on the EUP and the
    # reciprocal lowers to vrcp instead of a precise VPU divide.
    z = sp * x
    e = jnp.exp(-z)
    o = pl.reciprocal(1.0 + e, approx=True)
    o_ref[...] = o.astype(o_ref.dtype)


def _sublane_quantum(dtype):
    # f32 -> 8, bf16/f16 -> 16, int8/fp8 -> 32 (sublane packing).
    return {4: 8, 2: 16, 1: 32}.get(jnp.dtype(dtype).itemsize, 8)


def _device_kind():
    try:
        return jax.devices()[0].device_kind.lower()
    except Exception:
        return ""


def mask_nd_forward(x, g, params, *, block_rows=None):
    """x, g: (b, 1, t, h, w), same shape & dtype.  params: f32[5]."""
    assert x.shape == g.shape
    orig_shape = x.shape
    orig_dtype = x.dtype
    total = x.size

    # Widest lane-dense column count that divides the flat size -> copy-free
    # reshape, fully unmasked lane-dense stores.
    cols = None
    for c in (8 * LANES, 4 * LANES, 2 * LANES, LANES):
        if total % c == 0:
            cols = c
            break
    if cols is None:
        # Copy-free fallback for element counts not divisible by 128: keep the
        # original last dim as the lane axis (full-dim block -> divisibility
        # waiver).  No jnp.pad of inputs, no output slice -> 1x HBM traffic;
        # only lane density suffers on this rare path.
        cols = orig_shape[-1]

    rows = total // cols
    x2 = x.reshape(rows, cols)
    g2 = g.reshape(rows, cols)

    itemsize = jnp.dtype(orig_dtype).itemsize
    quantum = _sublane_quantum(orig_dtype)

    kind = _device_kind()
    is_v7 = ("v7" in kind) or ("7x" in kind)

    # v7x: bigger blocks to amortize the ~0.35us/step overhead against 3.2TB/s
    # HBM; v5e/v6e: keep 2 MiB (already >=92% amortized, less VMEM pressure).
    target_block_bytes = (4 if is_v7 else 2) * 1024 * 1024
    vmem_limit_bytes = (48 if is_v7 else 32) * 1024 * 1024

    if block_rows is None:
        br = (target_block_bytes // (cols * itemsize)) // quantum * quantum
        br = max(quantum, br)
    else:
        br = block_rows

    if rows <= br:
        br = rows          # full-dim block: (8,128) divisibility rule waived
        grid = (1,)
    else:
        grid = (pl.cdiv(rows, br),)   # ragged last block handled by Pallas

    # v7x: CORE_PARALLEL actually shards the grid axis across the 2 TCs; plain
    # "parallel" does not reliably engage both.  Fall back if unsupported.
    if is_v7:
        core_parallel = getattr(pltpu, "CORE_PARALLEL", "parallel")
        semantics_options = ((core_parallel,), ("parallel",))
    else:
        semantics_options = (("parallel",),)

    def _run(dim_sem):
        return pl.pallas_call(
            _mask_kernel,
            out_shape=jax.ShapeDtypeStruct((rows, cols), orig_dtype),
            grid_spec=pltpu.PrefetchScalarGridSpec(
                num_scalar_prefetch=0,
                grid=grid,
                in_specs=[
                    pl.BlockSpec(memory_space=pltpu.MemorySpace.SMEM),  # params
                    pl.BlockSpec((br, cols), lambda i: (i, 0)),         # x tile
                    pl.BlockSpec((br, cols), lambda i: (i, 0)),         # g tile
                ],
                out_specs=pl.BlockSpec((br, cols), lambda i: (i, 0)),
            ),
            compiler_params=pltpu.CompilerParams(
                dimension_semantics=dim_sem,
                vmem_limit_bytes=vmem_limit_bytes,
            ),
        )(params.astype(jnp.float32), x2, g2)

    out2d = None
    last_err = None
    for sem in semantics_options:
        try:
            out2d = _run(sem)
            break
        except Exception as e:   # e.g. CORE_PARALLEL rejected -> retry "parallel"
            last_err = e
    if out2d is None:
        raise last_err

    return out2d.reshape(orig_shape)


def _reference(x, g, params):
    w_theta, w_phi, b_phi, w_psi, b_psi = (params[i] for i in range(5))
    xf = x.astype(jnp.float32)
    gf = g.astype(jnp.float32)
    s = xf * w_theta + gf * w_phi + b_phi
    f = jnp.where(s >= 0, s, NEG_SLOPE * s)
    p = f * w_psi + b_psi
    sp = jnp.where(p >= 0, p, NEG_SLOPE * p)
    return jax.nn.sigmoid(sp * xf).astype(x.dtype)


if __name__ == "__main__":
    key = jax.random.PRNGKey(0)
    kx, kg, kw, kx2, kg2, kx3, kg3, kx4, kg4 = jax.random.split(key, 9)

    # Deterministic synthetic parameters for the three 1x1x1 convs:
    # [theta.weight, phi.weight, phi.bias, psi.weight, psi.bias]
    params = 0.5 * jax.random.normal(kw, (5,), dtype=jnp.float32)

    # Case 1: small shape, single block.
    b, c, t, h, w = 2, 1, 4, 8, 16
    x = jax.random.normal(kx, (b, c, t, h, w), dtype=jnp.float32)
    g = jax.random.normal(kg, (b, c, t, h, w), dtype=jnp.float32)
    y = mask_nd_forward(x, g, params)
    jax.block_until_ready(y)
    assert jnp.allclose(y, _reference(x, g, params), atol=2e-3, rtol=2e-3), \
        "mismatch vs reference (case 1)"

    # Case 2: multi-block grid with a ragged last block (forced small block).
    b2, c2, t2, h2, w2 = 2, 1, 5, 24, 128   # 30720 elems -> (30, 1024) view
    x_b = jax.random.normal(kx2, (b2, c2, t2, h2, w2), dtype=jnp.float32)
    g_b = jax.random.normal(kg2, (b2, c2, t2, h2, w2), dtype=jnp.float32)
    y_b = mask_nd_forward(x_b, g_b, params, block_rows=8)  # grid=4, last=6 rows
    jax.block_until_ready(y_b)
    assert jnp.allclose(y_b, _reference(x_b, g_b, params), atol=2e-3, rtol=2e-3), \
        "mismatch vs reference (case 2)"

    # Case 3: element count NOT a multiple of 128 -> copy-free full-last-dim
    # fallback path (no jnp.pad, no output slice).
    b3, c3, t3, h3, w3 = 2, 1, 3, 8, 20     # 960 elems -> (48, 20) view
    x_c = jax.random.normal(kx3, (b3, c3, t3, h3, w3), dtype=jnp.float32)
    g_c = jax.random.normal(kg3, (b3, c3, t3, h3, w3), dtype=jnp.float32)
    y_c = mask_nd_forward(x_c, g_c, params)
    jax.block_until_ready(y_c)
    assert jnp.allclose(y_c, _reference(x_c, g_c, params), atol=2e-3, rtol=2e-3), \
        "mismatch vs reference (case 3)"

    # Case 4: bf16 inputs (sublane quantum 16, native-dtype stores).
    b4, c4, t4, h4, w4 = 2, 1, 4, 16, 64    # 8192 elems -> (8, 1024) view
    x_d = jax.random.normal(kx4, (b4, c4, t4, h4, w4), dtype=jnp.bfloat16)
    g_d = jax.random.normal(kg4, (b4, c4, t4, h4, w4), dtype=jnp.bfloat16)
    y_d = mask_nd_forward(x_d, g_d, params)
    jax.block_until_ready(y_d)
    assert jnp.allclose(y_d.astype(jnp.float32),
                        _reference(x_d, g_d, params).astype(jnp.float32),
                        atol=1e-2, rtol=1e-2), \
        "mismatch vs reference (case 4, bf16)"

    print("KERNEL_OK")
</pallas_src>

<mosaic_0001>
module attributes {stable_mosaic.version = 11 : i64} {
  func.func @_mask_kernel(%arg0: i32, %arg1: memref<5xf32, #tpu.memory_space<smem>>, %arg2: memref<1x1024xf32, #tpu.memory_space<vmem>>, %arg3: memref<1x1024xf32, #tpu.memory_space<vmem>>, %arg4: memref<1x1024xf32, #tpu.memory_space<vmem>>) attributes {dimension_semantics = [#tpu.dimension_semantics<parallel>], iteration_bounds = array<i64: 1>, scalar_prefetch = 0 : i64, scratch_operands = 0 : i64, tpu.core_type = #tpu.core_type<tc>, window_params = [{transform_indices = @transform_0, window_bounds = array<i64: 5>}, {transform_indices = @transform_1, window_bounds = array<i64: 1, 1024>}, {transform_indices = @transform_2, window_bounds = array<i64: 1, 1024>}, {transform_indices = @transform_3, window_bounds = array<i64: 1, 1024>}]} {
    %c0 = arith.constant 0 : index
    %0 = memref.load %arg1[%c0] : memref<5xf32, #tpu.memory_space<smem>>
    %c1 = arith.constant 1 : index
    %1 = memref.load %arg1[%c1] : memref<5xf32, #tpu.memory_space<smem>>
    %c2 = arith.constant 2 : index
    %2 = memref.load %arg1[%c2] : memref<5xf32, #tpu.memory_space<smem>>
    %c3 = arith.constant 3 : index
    %3 = memref.load %arg1[%c3] : memref<5xf32, #tpu.memory_space<smem>>
    %c4 = arith.constant 4 : index
    %4 = memref.load %arg1[%c4] : memref<5xf32, #tpu.memory_space<smem>>
    %c0_0 = arith.constant 0 : index
    %c0_1 = arith.constant 0 : index
    %5 = vector.load %arg2[%c0_0, %c0_1] : memref<1x1024xf32, #tpu.memory_space<vmem>>, vector<1x1024xf32>
    %c0_2 = arith.constant 0 : index
    %c0_3 = arith.constant 0 : index
    %6 = vector.load %arg3[%c0_2, %c0_3] : memref<1x1024xf32, #tpu.memory_space<vmem>>, vector<1x1024xf32>
    %7 = vector.broadcast %0 : f32 to vector<1x1024xf32>
    %8 = arith.mulf %5, %7 : vector<1x1024xf32>
    %9 = vector.broadcast %1 : f32 to vector<1x1024xf32>
    %10 = arith.mulf %6, %9 : vector<1x1024xf32>
    %11 = arith.addf %8, %10 : vector<1x1024xf32>
    %12 = vector.broadcast %2 : f32 to vector<1x1024xf32>
    %13 = arith.addf %11, %12 : vector<1x1024xf32>
    %cst = arith.constant 0.00999999977 : f32
    %14 = vector.broadcast %cst : f32 to vector<1x1024xf32>
    %15 = arith.mulf %14, %13 : vector<1x1024xf32>
    %16 = arith.maximumf %13, %15 : vector<1x1024xf32>
    %17 = vector.broadcast %3 : f32 to vector<1x1024xf32>
    %18 = arith.mulf %16, %17 : vector<1x1024xf32>
    %19 = vector.broadcast %4 : f32 to vector<1x1024xf32>
    %20 = arith.addf %18, %19 : vector<1x1024xf32>
    %cst_4 = arith.constant 0.00999999977 : f32
    %21 = vector.broadcast %cst_4 : f32 to vector<1x1024xf32>
    %22 = arith.mulf %21, %20 : vector<1x1024xf32>
    %23 = arith.maximumf %20, %22 : vector<1x1024xf32>
    %24 = arith.mulf %23, %5 : vector<1x1024xf32>
    %cst_5 = arith.constant 0.000000e+00 : f32
    %25 = vector.broadcast %cst_5 : f32 to vector<1x1024xf32>
    %26 = arith.subf %25, %24 : vector<1x1024xf32>
    %27 = math.exp %26 : vector<1x1024xf32>
    %cst_6 = arith.constant 1.000000e+00 : f32
    %28 = vector.broadcast %cst_6 : f32 to vector<1x1024xf32>
    %29 = arith.addf %28, %27 : vector<1x1024xf32>
    %30 = tpu.reciprocal %29 {approx = true} : vector<1x1024xf32> -> vector<1x1024xf32>
    %c0_7 = arith.constant 0 : index
    %c0_8 = arith.constant 0 : index
    %31 = vector.load %arg4[%c0_7, %c0_8] : memref<1x1024xf32, #tpu.memory_space<vmem>>, vector<1x1024xf32>
    tpu.vector_store %arg4[%c0_7, %c0_8], %30 {strides = array<i32>} : memref<1x1024xf32, #tpu.memory_space<vmem>>, vector<1x1024xf32>,
    return
  }
  func.func @transform_0(%arg0: i32) -> i32 {
    %c0_i32 = arith.constant 0 : i32
    %c0_i32_0 = arith.constant 0 : i32
    return %c0_i32 : i32
  }
  func.func @transform_1(%arg0: i32) -> (i32, i32) {
    %c0_i32 = arith.constant 0 : i32
    %c0_i32_0 = arith.constant 0 : i32
    return %arg0, %c0_i32 : i32, i32
  }
  func.func @transform_2(%arg0: i32) -> (i32, i32) {
    %c0_i32 = arith.constant 0 : i32
    %c0_i32_0 = arith.constant 0 : i32
    return %arg0, %c0_i32 : i32, i32
  }
  func.func @transform_3(%arg0: i32) -> (i32, i32) {
    %c0_i32 = arith.constant 0 : i32
    %c0_i32_0 = arith.constant 0 : i32
    return %arg0, %c0_i32 : i32, i32
  }
}

</mosaic_0001>

<bundles_post_ra>
// kernel: tpu_custom_call.1
= control target key start
LH: loop header
LB: loop body
LE: loop exit
PB: predicated region body
PF: predicated region fallthrough
CT: control target
= control target key end

     0   :  { %8 = vsyncpa [#allocation5], 0  ;;  %s244_s0 = inlined_call_operand.hbm [shape: f32[5], index: 0, kind: input, shape index: {}]   ;;  %s245_s1 = inlined_call_operand.hbm [shape: f32[1,1024], index: 1, kind: input, shape index: {}]   ;;  %s246_s2 = inlined_call_operand.hbm [shape: f32[1,1024], index: 2, kind: input, shape index: {}]   ;;  %s247_s3 = inlined_call_operand.hbm [shape: f32[1,1024], index: 3, kind: output, shape index: {}]  }
   0x1   :  { %9 = vsyncpa [#allocation3], 0 }
   0x2   :  { %10 = vsyncpa [#allocation8], 0 }
   0x3   :  { %11 = vsyncpa [#allocation4], 0  ;;  %s17_s14 = sshll.u32 %s244_s0, 4  ;;  %s26_s17 = sshll.u32 %s245_s1, 4  ;;  %s18_s14 = int_to_ptr.hbm [resolvable:$true] %s17_s14  ;;  %s27_s17 = int_to_ptr.hbm [resolvable:$true] %s26_s17 }
   0x4   :  { %s208_s18 = smov [#allocation2]   ;;  %s209_s19 = smov [#allocation6]  }
   0x5   :  { %20 = dma.hbm_to_smem %s18_s14, 16, %s208_s18, [#allocation5]  }
   0x6   :  { %s28_s20 = sshll.u32 %s209_s19, 4  ;;  %s37_s23 = sshll.u32 %s246_s2, 4  ;;  %s29_s20 = int_to_ptr.vmem [resolvable:$true] %s28_s20  ;;  %s38_s23 = int_to_ptr.hbm [resolvable:$true] %s37_s23 }
   0x7   :  { %31 = dma.hbm_to_vmem [thread:$0]  %s27_s17, 128, %s29_s20, [#allocation3]  }
   0x8   :  { %s210_s24 = smov [#allocation7]  }
   0x9   :  { %s39_s25 = sshll.u32 %s210_s24, 4  ;;  %s40_s25 = int_to_ptr.vmem [resolvable:$true] %s39_s25 }
   0xa   :  { %42 = dma.hbm_to_vmem [thread:$0]  %s38_s23, 128, %s40_s25, [#allocation8]  }
   0xb   :  { %200 = dma.done.wait [#allocation5], 16  }
   0xc   :  { %201 = vsyncadd [#allocation5], 4294967280 }
   0xd   :  { %202 = dma.done.wait [#allocation3], 128  }
   0xe   :  { %203 = vsyncadd [#allocation3], 4294967168 }
   0xf   :  { %204 = dma.done.wait [#allocation8], 128  }
  0x10   :  { %205 = vsyncadd [#allocation8], 4294967168 }
  0x11   :  { %55 = sfence }
  0x12   :  { %s56_s0 = sld [smem:[#allocation2]]  ;;  %v61_v0 = vld [vmem:[#allocation6] sm:$0xff]  ;;  %v62_v1 = vld [vmem:[#allocation7] sm:$0xff]  ;;  %s211_s28 = smov [#allocation9]  }
  0x13   :  { %s104_s1 = sld [smem:[#allocation2 + $0x1]]  ;;  %s90_s29 = sshll.u32 %s211_s28, 4  ;;  %s91_s29 = int_to_ptr.vmem [resolvable:$true] %s90_s29 }
  0x14   :  { %s105_s26 = sld [smem:[#allocation2 + $0x2]]  ;;  %s92_s5 = sshll.u32 %s247_s3, 4  ;;  %s93_s5 = int_to_ptr.hbm [resolvable:$true] %s92_s5 }
  0x15   :  { %s106_s2 = sld [smem:[#allocation2 + $0x3]] }
  0x16   :  { %s107_s27 = sld [smem:[#allocation2 + $0x4]] }
  0x18   :  { %v63_v2 = vstv %s56_s0 }
  0x19   :  { %v64_v3 = vmul.f32 %v63_v2, %v61_v0  ;;  %v65_v4 = vstv %s104_s1 }
  0x1a   :  { %v66_v5 = vmul.f32 %v65_v4, %v62_v1  ;;  %v68_v6 = vstv %s105_s26 }
  0x1b   :  { %v72_v10 = vstv %s106_s2 }
  0x1c   :  { %v67_v7 = vadd.f32 %v66_v5, %v64_v3  ;;  %v74_v12 = vstv %s107_s27 }
  0x1e   :  { %v69_v8 = vadd.f32 %v68_v6, %v67_v7 }
  0x20   :  { %v70_v9 = vmul.f32 0.01, %v69_v8 }
  0x22   :  { %v71_v11 = vmax.f32 %v69_v8, %v70_v9 }
  0x24   :  { %v73_v13 = vmul.f32 %v72_v10, %v71_v11 }
  0x26   :  { %v75_v14 = vadd.f32 %v74_v12, %v73_v13 }
  0x28   :  { %v76_v15 = vmul.f32 0.01, %v75_v14 }
  0x2a   :  { %v77_v16 = vmax.f32 %v75_v14, %v76_v15 }
  0x2c   :  { %v78_v17 = vmul.f32 %v77_v16, %v61_v0 }
  0x2e   :  { %v79_v18 = vsub.f32 0.0, %v78_v17 }
  0x30   :  { %v80_v19 = vmul.f32 1.442695, %v79_v18 }
  0x32   :  { %112 = vpow2.f32 %v80_v19 }
  0x38   :  { %v113_v20 = vpop.eup %112 }
  0x39   :  { %v82_v21 = vadd.f32 1.0, %v113_v20 }
  0x3b   :  { %114 = vrcp.f32 %v82_v21 }
  0x41   :  { %v115_v22 = vpop.eup %114 }
  0x42   :  { %84 = vst [vmem:[#allocation9] sm:$0xff] %v115_v22 }
  0x43   :  { %95 = dma.vmem_to_hbm [thread:$0]  %s91_s29, 128, %s93_s5, [#allocation4]  }
  0x44   :  { %206 = dma.done.wait [#allocation4], 128  }
  0x45   :  { %207 = vsyncadd [#allocation4], 4294967168 }
  0x46   :  { %100 = vsyncpa [#allocation3], 1 }
  0x47   :  { %101 = vsyncpa [#allocation8], 1 }
  0x48   :  { %102 = vsyncpa [#allocation4], 1 }
  0x49   :  { %103 = vsyncpa [#allocation5], 1 }

</bundles_post_ra>
